<compile_context>
chip_gen: v5e
topology: v5e:2x2
jax: 0.10.0
libtpu: 0.0.40
codegen_flags: <defaults>
</compile_context>

<pallas_src>
import functools

import jax
import jax.numpy as jnp
from jax.experimental import pallas as pl
from jax.experimental.pallas import tpu as pltpu

_BLOCK_ELEMS = 512 * 1024  # ~2 MiB per f32 buffer


def _pow_focal(w, gamma: float):
    """(1 - p_t) ** gamma with cheap multiply chains for small integer gamma."""
    g = float(gamma)
    if g == 0.0:
        return jnp.ones_like(w)
    if g == int(g) and 1 <= int(g) <= 8:
        out = w
        for _ in range(int(g) - 1):
            out = out * w
        return out
    return jnp.power(w, jnp.float32(g))


def _focal_math(x, t, alpha: float, gamma: float):
    """Elementwise sigmoid focal loss in f32; one exp + one log1p per element."""
    e = jnp.exp(-jnp.abs(x))                   # shared transcendental (EUP)
    inv = 1.0 / (1.0 + e)                      # sigmoid(|x|)
    p = jnp.where(x >= 0, inv, e * inv)        # sigmoid(x), exact for both signs
    # Numerically stable BCE-with-logits (reduction='none'):
    ce = jnp.maximum(x, 0.0) - x * t + jnp.log1p(e)
    # w = 1 - p_t = p + t - 2*p*t   (fused form, fewer VPU ops)
    w = p + t * (1.0 - 2.0 * p)
    loss = ce * _pow_focal(w, gamma)
    if alpha >= 0:
        # alpha_t = alpha*t + (1-alpha)*(1-t) = (1-alpha) + t*(2*alpha - 1)
        alpha_t = (1.0 - alpha) + t * (2.0 * alpha - 1.0)
        loss = alpha_t * loss
    return loss


def _focal_loss_elem_kernel(x_ref, t_ref, o_ref, *, alpha, gamma):
    x = x_ref[...].astype(jnp.float32)
    t = t_ref[...].astype(jnp.float32)
    o_ref[...] = _focal_math(x, t, alpha, gamma).astype(o_ref.dtype)


def _focal_loss_reduce_kernel(x_ref, t_ref, o_ref, *, alpha, gamma,
                              n_valid, block_rows, lanes, needs_mask):
    pid = pl.program_id(0)
    last = pl.num_programs(0) - 1

    @pl.when(pid == 0)
    def _():
        o_ref[...] = jnp.zeros_like(o_ref)

    x = x_ref[...].astype(jnp.float32)
    t = t_ref[...].astype(jnp.float32)
    loss = _focal_math(x, t, alpha, gamma)

    if needs_mask:
        # Only the last grid block can contain padded / OOB elements; pay the
        # iota + compare + select cost only there.
        @pl.when(pid != last)
        def _():
            o_ref[0, 0] += jnp.sum(loss)

        @pl.when(pid == last)
        def _():
            rows = jax.lax.broadcasted_iota(jnp.int32, loss.shape, 0)
            cols = jax.lax.broadcasted_iota(jnp.int32, loss.shape, 1)
            flat = (pid * block_rows + rows) * lanes + cols
            o_ref[0, 0] += jnp.sum(jnp.where(flat < n_valid, loss, 0.0))
    else:
        o_ref[0, 0] += jnp.sum(loss)


def _choose_layout(n: int):
    """Pick a wide lane dimension that divides n (no pad copy) when possible."""
    for lanes in (2048, 1024, 512, 256, 128):
        if n % lanes == 0:
            return lanes, 0
    lanes = 128
    return lanes, (-n) % lanes  # worst case: <=127-element pad


def sigmoid_focal_loss_pallas(inputs: jax.Array,
                              targets: jax.Array,
                              alpha: float = 0.25,
                              gamma: float = 2.0,
                              reduction: str = "none") -> jax.Array:
    if reduction not in ("none", "mean", "sum"):
        raise ValueError(f"Invalid reduction: {reduction}")

    orig_shape = inputs.shape
    orig_dtype = inputs.dtype
    n = int(inputs.size)

    lanes, pad = _choose_layout(n)
    x_flat = jnp.reshape(inputs, (-1,))
    t_flat = jnp.reshape(targets, (-1,))
    if pad:
        x_flat = jnp.pad(x_flat, (0, pad))
        t_flat = jnp.pad(t_flat, (0, pad))

    m = (n + pad) // lanes
    x2d = jnp.reshape(x_flat, (m, lanes))
    t2d = jnp.reshape(t_flat, (m, lanes))

    target_rows = max(8, _BLOCK_ELEMS // lanes)   # multiple of 8 for all lane widths
    block_rows = m if m <= target_rows else target_rows
    block = (block_rows, lanes)
    grid = (pl.cdiv(m, block_rows),)
    needs_mask = (pad > 0) or (m % block_rows != 0)

    in_specs = [
        pl.BlockSpec(block, lambda i: (i, 0)),
        pl.BlockSpec(block, lambda i: (i, 0)),
    ]

    if reduction == "none":
        kernel = functools.partial(_focal_loss_elem_kernel, alpha=alpha, gamma=gamma)
        out2d = pl.pallas_call(
            kernel,
            out_shape=jax.ShapeDtypeStruct((m, lanes), orig_dtype),
            grid_spec=pltpu.PrefetchScalarGridSpec(
                num_scalar_prefetch=0,
                grid=grid,
                in_specs=in_specs,
                out_specs=pl.BlockSpec(block, lambda i: (i, 0)),
            ),
            compiler_params=pltpu.CompilerParams(
                dimension_semantics=("parallel",)),
        )(x2d, t2d)
        loss_flat = jnp.reshape(out2d, (-1,))
        if pad:
            loss_flat = loss_flat[:n]
        return jnp.reshape(loss_flat, orig_shape)

    # Fused sum/mean: accumulate an f32 partial sum into a resident (1,1) output block.
    kernel = functools.partial(
        _focal_loss_reduce_kernel, alpha=alpha, gamma=gamma,
        n_valid=n, block_rows=block_rows, lanes=lanes, needs_mask=needs_mask)
    total = pl.pallas_call(
        kernel,
        out_shape=jax.ShapeDtypeStruct((1, 1), jnp.float32),
        grid_spec=pltpu.PrefetchScalarGridSpec(
            num_scalar_prefetch=0,
            grid=grid,
            in_specs=in_specs,
            out_specs=pl.BlockSpec((1, 1), lambda i: (0, 0)),
        ),
        compiler_params=pltpu.CompilerParams(
            dimension_semantics=("arbitrary",)),
    )(x2d, t2d)[0, 0]

    if reduction == "mean":
        total = total / jnp.float32(n)
    return total.astype(orig_dtype)


class FocalLoss:
    """JAX/Pallas port of the PyTorch FocalLoss module (forward only)."""

    def __init__(self, alpha: float = 0.25, gamma: float = 2.0, reduction: str = "none"):
        self.alpha = alpha
        self.gamma = gamma
        self.reduction = reduction

    def __call__(self, inputs: jax.Array, targets: jax.Array) -> jax.Array:
        return sigmoid_focal_loss_pallas(
            inputs, targets,
            alpha=self.alpha, gamma=self.gamma, reduction=self.reduction)


def _ref_focal_loss(logits, targets, alpha=0.25, gamma=2.0):
    logits = logits.astype(jnp.float32)
    targets = targets.astype(jnp.float32)
    p = jax.nn.sigmoid(logits)
    ce = jnp.maximum(logits, 0.0) - logits * targets + jnp.log1p(jnp.exp(-jnp.abs(logits)))
    p_t = p * targets + (1 - p) * (1 - targets)
    loss = ce * (1 - p_t) ** gamma
    if alpha >= 0:
        loss = (alpha * targets + (1 - alpha) * (1 - targets)) * loss
    return loss


if __name__ == "__main__":
    key = jax.random.PRNGKey(0)
    k1, k2, k3, k4 = jax.random.split(key, 4)

    # Primary test: NCHW logits and binary targets (matches module usage).
    shape = (2, 4, 16, 16)
    logits = jax.random.normal(k1, shape, dtype=jnp.float32)
    targets = (jax.random.uniform(k2, shape) > 0.5).astype(jnp.float32)

    out = FocalLoss(alpha=0.25, gamma=2.0, reduction="none")(logits, targets)
    jax.block_until_ready(out)
    assert out.shape == shape and out.dtype == logits.dtype
    ref = _ref_focal_loss(logits, targets)
    assert jnp.allclose(out, ref, atol=1e-5, rtol=1e-5)

    # Fused reductions.
    s = FocalLoss(reduction="sum")(logits, targets)
    mn = FocalLoss(reduction="mean")(logits, targets)
    jax.block_until_ready((s, mn))
    assert jnp.allclose(s, jnp.sum(ref), atol=1e-3, rtol=1e-5)
    assert jnp.allclose(mn, jnp.mean(ref), atol=1e-6, rtol=1e-5)

    # Awkward shape: exercises the pad / partial-block masking path.
    shape2 = (3, 5, 7, 11)
    logits2 = jax.random.normal(k3, shape2, dtype=jnp.float32)
    targets2 = (jax.random.uniform(k4, shape2) > 0.5).astype(jnp.float32)
    out2 = FocalLoss(reduction="none")(logits2, targets2)
    s2 = FocalLoss(reduction="sum")(logits2, targets2)
    jax.block_until_ready((out2, s2))
    ref2 = _ref_focal_loss(logits2, targets2)
    assert out2.shape == shape2
    assert jnp.allclose(out2, ref2, atol=1e-5, rtol=1e-5)
    assert jnp.allclose(s2, jnp.sum(ref2), atol=1e-3, rtol=1e-5)

    # bf16 inputs: narrow dtype goes straight through HBM; f32 math inside the kernel.
    logits_bf = logits.astype(jnp.bfloat16)
    targets_bf = targets.astype(jnp.bfloat16)
    out_bf = FocalLoss(reduction="none")(logits_bf, targets_bf)
    jax.block_until_ready(out_bf)
    assert out_bf.dtype == jnp.bfloat16
    ref_bf = _ref_focal_loss(logits_bf, targets_bf)
    assert jnp.allclose(out_bf.astype(jnp.float32), ref_bf, atol=2e-2, rtol=2e-2)

    print("KERNEL_OK")
</pallas_src>

<mosaic_0001>
module attributes {stable_mosaic.version = 11 : i64} {
  func.func @_focal_loss_elem_kernel(%arg0: i32, %arg1: memref<1x2048xf32, #tpu.memory_space<vmem>>, %arg2: memref<1x2048xf32, #tpu.memory_space<vmem>>, %arg3: memref<1x2048xf32, #tpu.memory_space<vmem>>) attributes {dimension_semantics = [#tpu.dimension_semantics<parallel>], iteration_bounds = array<i64: 1>, scalar_prefetch = 0 : i64, scratch_operands = 0 : i64, tpu.core_type = #tpu.core_type<tc>, window_params = [{transform_indices = @transform_0, window_bounds = array<i64: 1, 2048>}, {transform_indices = @transform_1, window_bounds = array<i64: 1, 2048>}, {transform_indices = @transform_2, window_bounds = array<i64: 1, 2048>}]} {
    %c0 = arith.constant 0 : index
    %c0_0 = arith.constant 0 : index
    %0 = vector.load %arg1[%c0, %c0_0] : memref<1x2048xf32, #tpu.memory_space<vmem>>, vector<1x2048xf32>
    %c0_1 = arith.constant 0 : index
    %c0_2 = arith.constant 0 : index
    %1 = vector.load %arg2[%c0_1, %c0_2] : memref<1x2048xf32, #tpu.memory_space<vmem>>, vector<1x2048xf32>
    %2 = math.absf %0 : vector<1x2048xf32>
    %cst = arith.constant 0.000000e+00 : f32
    %3 = vector.broadcast %cst : f32 to vector<1x2048xf32>
    %4 = arith.subf %3, %2 : vector<1x2048xf32>
    %5 = math.exp %4 : vector<1x2048xf32>
    %cst_3 = arith.constant 1.000000e+00 : f32
    %6 = vector.broadcast %cst_3 : f32 to vector<1x2048xf32>
    %7 = arith.addf %6, %5 : vector<1x2048xf32>
    %cst_4 = arith.constant 1.000000e+00 : f32
    %8 = vector.broadcast %cst_4 : f32 to vector<1x2048xf32>
    %9 = arith.divf %8, %7 : vector<1x2048xf32>
    %cst_5 = arith.constant 0.000000e+00 : f32
    %10 = vector.broadcast %cst_5 : f32 to vector<1x2048xf32>
    %11 = arith.cmpf oge, %0, %10 : vector<1x2048xf32>
    %12 = arith.mulf %5, %9 : vector<1x2048xf32>
    %13 = arith.select %11, %9, %12 : vector<1x2048xi1>, vector<1x2048xf32>
    %cst_6 = arith.constant 0.000000e+00 : f32
    %14 = vector.broadcast %cst_6 : f32 to vector<1x2048xf32>
    %15 = arith.maximumf %0, %14 : vector<1x2048xf32>
    %16 = arith.mulf %0, %1 : vector<1x2048xf32>
    %17 = arith.subf %15, %16 : vector<1x2048xf32>
    %18 = math.log1p %5 : vector<1x2048xf32>
    %19 = arith.addf %17, %18 : vector<1x2048xf32>
    %cst_7 = arith.constant 2.000000e+00 : f32
    %20 = vector.broadcast %cst_7 : f32 to vector<1x2048xf32>
    %21 = arith.mulf %20, %13 : vector<1x2048xf32>
    %cst_8 = arith.constant 1.000000e+00 : f32
    %22 = vector.broadcast %cst_8 : f32 to vector<1x2048xf32>
    %23 = arith.subf %22, %21 : vector<1x2048xf32>
    %24 = arith.mulf %1, %23 : vector<1x2048xf32>
    %25 = arith.addf %13, %24 : vector<1x2048xf32>
    %26 = arith.mulf %25, %25 : vector<1x2048xf32>
    %27 = arith.mulf %19, %26 : vector<1x2048xf32>
    %cst_9 = arith.constant -5.000000e-01 : f32
    %28 = vector.broadcast %cst_9 : f32 to vector<1x2048xf32>
    %29 = arith.mulf %1, %28 : vector<1x2048xf32>
    %cst_10 = arith.constant 7.500000e-01 : f32
    %30 = vector.broadcast %cst_10 : f32 to vector<1x2048xf32>
    %31 = arith.addf %30, %29 : vector<1x2048xf32>
    %32 = arith.mulf %31, %27 : vector<1x2048xf32>
    %c0_11 = arith.constant 0 : index
    %c0_12 = arith.constant 0 : index
    %33 = vector.load %arg3[%c0_11, %c0_12] : memref<1x2048xf32, #tpu.memory_space<vmem>>, vector<1x2048xf32>
    tpu.vector_store %arg3[%c0_11, %c0_12], %32 {strides = array<i32>} : memref<1x2048xf32, #tpu.memory_space<vmem>>, vector<1x2048xf32>,
    return
  }
  func.func @transform_0(%arg0: i32) -> (i32, i32) {
    %c0_i32 = arith.constant 0 : i32
    %c0_i32_0 = arith.constant 0 : i32
    return %arg0, %c0_i32 : i32, i32
  }
  func.func @transform_1(%arg0: i32) -> (i32, i32) {
    %c0_i32 = arith.constant 0 : i32
    %c0_i32_0 = arith.constant 0 : i32
    return %arg0, %c0_i32 : i32, i32
  }
  func.func @transform_2(%arg0: i32) -> (i32, i32) {
    %c0_i32 = arith.constant 0 : i32
    %c0_i32_0 = arith.constant 0 : i32
    return %arg0, %c0_i32 : i32, i32
  }
}

</mosaic_0001>

<bundles_post_ra>
// kernel: tpu_custom_call.1
= control target key start
LH: loop header
LB: loop body
LE: loop exit
PB: predicated region body
PF: predicated region fallthrough
CT: control target
= control target key end

     0   :  { %7 = vsyncpa [#allocation3], 0  ;;  %s311_s0 = inlined_call_operand.hbm [shape: f32[1,2048], index: 0, kind: input, shape index: {}]   ;;  %s312_s1 = inlined_call_operand.hbm [shape: f32[1,2048], index: 1, kind: input, shape index: {}]   ;;  %s313_s2 = inlined_call_operand.hbm [shape: f32[1,2048], index: 2, kind: output, shape index: {}]  }
   0x1   :  { %8 = vsyncpa [#allocation6], 0 }
   0x2   :  { %9 = vsyncpa [#allocation4], 0  ;;  %s15_s11 = sshll.u32 %s311_s0, 4  ;;  %s247_s12 = smov [#allocation2]   ;;  %s16_s11 = int_to_ptr.hbm [resolvable:$true] %s15_s11 }
   0x3   :  { %s17_s13 = sshll.u32 %s247_s12, 4  ;;  %s26_s16 = sshll.u32 %s312_s1, 4  ;;  %s18_s13 = int_to_ptr.vmem [resolvable:$true] %s17_s13  ;;  %s27_s16 = int_to_ptr.hbm [resolvable:$true] %s26_s16 }
   0x4   :  { %20 = dma.hbm_to_vmem [thread:$0]  %s16_s11, 256, %s18_s13, [#allocation3]  }
   0x5   :  { %s248_s17 = smov [#allocation5]  }
   0x6   :  { %s28_s18 = sshll.u32 %s248_s17, 4  ;;  %s29_s18 = int_to_ptr.vmem [resolvable:$true] %s28_s18 }
   0x7   :  { %31 = dma.hbm_to_vmem [thread:$0]  %s27_s16, 256, %s29_s18, [#allocation6]  }
   0x8   :  { %241 = dma.done.wait [#allocation3], 256  }
   0x9   :  { %242 = vsyncadd [#allocation3], 4294967040 }
   0xa   :  { %243 = dma.done.wait [#allocation6], 256  }
   0xb   :  { %244 = vsyncadd [#allocation6], 4294967040  ;;  %v271_v0 = vld [vmem:[#allocation2] sm:$0xff]  ;;  %v273_v1 = vld [vmem:[#allocation2 + $0x8] sm:$0xff]  ;;  %s249_s0 = smov [#allocation7]   ;;  %s143_s21 = sshll.u32 %s313_s2, 4  ;;  %s144_s21 = int_to_ptr.hbm [resolvable:$true] %s143_s21 }
   0xc   :  { %v44_v2 = vand.u32 2147483647, %v271_v0  ;;  %v45_v3 = vand.u32 2147483647, %v273_v1  ;;  %v42_v31 = vld [vmem:[#allocation5] sm:$0xff]  ;;  %vm84_vm8 = vcmp.ge.f32.partialorder %v271_v0, 0.0 }
   0xd   :  { %v90_v39 = vmax.f32 %v271_v0, 0.0  ;;  %v43_v40 = vld [vmem:[#allocation5 + $0x8] sm:$0xff]  ;;  %v92_v44 = vmul.f32 %v42_v31, %v271_v0  ;;  %vm85_vm9 = vcmp.ge.f32.partialorder %v273_v1, 0.0  ;;  %v91_v53 = vmax.f32 %v273_v1, 0.0  ;;  %s141_s1 = sshll.u32 %s249_s0, 4  ;;  %s142_s1 = int_to_ptr.vmem [resolvable:$true] %s141_s1 }
   0xe   :  { %v46_v4 = vsub.f32 0.0, %v44_v2  ;;  %v47_v5 = vsub.f32 0.0, %v45_v3  ;;  %v93_v54 = vmul.f32 %v43_v40, %v273_v1  ;;  %v128_v63 = vmul.f32 -0.5, %v42_v31 }
   0xf   :  { %v94_v58 = vsub.f32 %v90_v39, %v92_v44  ;;  %v129_v1 = vmul.f32 -0.5, %v43_v40 }
  0x10   :  { %v48_v6 = vmul.f32 1.442695, %v46_v4  ;;  %v50_v7 = vmul.f32 1.442695, %v47_v5  ;;  %v95_v0 = vsub.f32 %v91_v53, %v93_v54 }
  0x12   :  { %157 = vpow2.f32 %v48_v6 }
  0x13   :  { %159 = vpow2.f32 %v50_v7 }
  0x18   :  { %v158_v8 = vpop.eup %157 }
  0x19   :  { %v277_v9 = vpop.eup %159  ;;  %v52_v10 = vadd.f32 1.0, %v158_v8  ;;  %v99_v19 = vmul.f32 -0.5, %v158_v8  ;;  %v102_v37 = vand.u32 2147483647, %v158_v8 }
  0x1a   :  { %v53_v11 = vadd.f32 1.0, %v277_v9  ;;  %v108_v28 = vmul.f32 -0.5, %v277_v9  ;;  %v111_v46 = vand.u32 2147483647, %v277_v9 }
  0x1b   :  { %161 = vrcp.f32 %v52_v10  ;;  %vm59_vm0 = vweird.f32 %v52_v10  ;;  %v65_v15 = vand.u32 2147483648, %v52_v10  ;;  %v63_v17 = vand.u32 2147483647, %v52_v10 }
  0x1c   :  { %163 = vrcp.f32 %v53_v11  ;;  %vm74_vm2 = vweird.f32 %v53_v11  ;;  %v80_v20 = vand.u32 2147483648, %v53_v11  ;;  %v78_v23 = vand.u32 2147483647, %v53_v11 }
  0x1d   :  { %165 = vlog2.f32 %v52_v10  ;;  %v66_v25 = vor.u32 1.1754944e-38, %v65_v15  ;;  %vm64_vm5 = vcmp.eq.f32.partialorder %v63_v17, 8.507059e+37  ;;  %v100_v33 = vadd.f32 1.0, %v99_v19 }
  0x1e   :  { %167 = vlog2.f32 %v53_v11  ;;  %v81_v30 = vor.u32 1.1754944e-38, %v80_v20  ;;  %vm79_vm7 = vcmp.eq.f32.partialorder %v78_v23, 8.507059e+37  ;;  %v109_v42 = vadd.f32 1.0, %v108_v28 }
  0x1f   :  { %v101_v49 = vmul.f32 %v158_v8, %v100_v33  ;;  %vm299_vm10 = vcmp.lt.f32.partialorder %v102_v37, 0.0004427343  ;;  %vm112_vm11 = vcmp.lt.f32.partialorder %v111_v46, 0.0004427343 }
  0x20   :  { %v110_v57 = vmul.f32 %v277_v9, %v109_v42 }
  0x21   :  { %v162_v12 = vpop.eup %161 }
  0x22   :  { %v55_v13 = vmul.f32 %v162_v12, %v52_v10  ;;  %v164_v14 = vpop.eup %163  ;;  %vm60_vm1 = vweird.f32 %v162_v12 }
  0x23   :  { %v70_v18 = vmul.f32 %v164_v14, %v53_v11  ;;  %vm75_vm3 = vweird.f32 %v164_v14  ;;  %vm280_vm4 = vmor %vm59_vm0, %vm60_vm1  ;;  %v166_v35 = vpop.eup %165 }
  0x24   :  { %v56_v16 = vsub.f32 1.0, %v55_v13  ;;  %vm285_vm6 = vmor %vm74_vm2, %vm75_vm3  ;;  %v168_v43 = vpop.eup %167  ;;  %v98_v48 = vmul.f32 0.6931472, %v166_v35  ;;  %v131_v13 = vadd.f32 0.75, %v129_v1 }
  0x25   :  { %v71_v22 = vsub.f32 1.0, %v70_v18  ;;  %v107_v56 = vmul.f32 0.6931472, %v168_v43 }
  0x26   :  { %v57_v21 = vmul.f32 %v162_v12, %v56_v16  ;;  %v104_v61 = vsel %vm299_vm10, %v101_v49, %v98_v48 }
  0x27   :  { %v72_v27 = vmul.f32 %v164_v14, %v71_v22  ;;  %v113_v3 = vsel %vm112_vm11, %v110_v57, %v107_v56  ;;  %v114_v4 = vadd.f32 %v104_v61, %v94_v58 }
  0x28   :  { %v58_v26 = vadd.f32 %v162_v12, %v57_v21  ;;  %v115_v10 = vadd.f32 %v113_v3, %v95_v0 }
  0x29   :  { %v73_v34 = vadd.f32 %v164_v14, %v72_v27 }
  0x2a   :  { %v62_v32 = vsel %vm280_vm4, %v162_v12, %v58_v26 }
  0x2b   :  { %v67_v36 = vsel %vm64_vm5, %v66_v25, %v62_v32  ;;  %v77_v41 = vsel %vm285_vm6, %v164_v14, %v73_v34 }
  0x2c   :  { %v86_v38 = vmul.f32 %v158_v8, %v67_v36  ;;  %v82_v45 = vsel %vm79_vm7, %v81_v30, %v77_v41  ;;  %v130_v8 = vadd.f32 0.75, %v128_v63 }
  0x2d   :  { %v87_v50 = vmul.f32 %v277_v9, %v82_v45 }
  0x2e   :  { %v88_v47 = vsel %vm84_vm8, %v67_v36, %v86_v38 }
  0x2f   :  { %v116_v52 = vmul.f32 2.0, %v88_v47  ;;  %v89_v55 = vsel %vm85_vm9, %v82_v45, %v87_v50 }
  0x30   :  { %v117_v60 = vmul.f32 2.0, %v89_v55 }
  0x31   :  { %v118_v59 = vsub.f32 1.0, %v116_v52 }
  0x32   :  { %v119_v2 = vsub.f32 1.0, %v117_v60 }
  0x33   :  { %v120_v62 = vmul.f32 %v118_v59, %v42_v31 }
  0x34   :  { %v121_v6 = vmul.f32 %v119_v2, %v43_v40 }
  0x35   :  { %v122_v5 = vadd.f32 %v120_v62, %v88_v47 }
  0x36   :  { %v123_v9 = vadd.f32 %v121_v6, %v89_v55 }
  0x37   :  { %v124_v7 = vmul.f32 %v122_v5, %v122_v5 }
  0x38   :  { %v125_v12 = vmul.f32 %v123_v9, %v123_v9 }
  0x39   :  { %v126_v11 = vmul.f32 %v124_v7, %v114_v4 }
  0x3a   :  { %v127_v15 = vmul.f32 %v125_v12, %v115_v10 }
  0x3b   :  { %v132_v14 = vmul.f32 %v130_v8, %v126_v11 }
  0x3c   :  { %v133_v16 = vmul.f32 %v131_v13, %v127_v15 }
  0x3d   :  { %134 = vst [vmem:[#allocation7] sm:$0xff] %v132_v14 }
  0x3e   :  { %135 = vst [vmem:[#allocation7 + $0x8] sm:$0xff] %v133_v16 }
  0x3f   :  { %146 = dma.vmem_to_hbm [thread:$0]  %s142_s1, 256, %s144_s21, [#allocation4]  }
  0x40   :  { %245 = dma.done.wait [#allocation4], 256  }
  0x41   :  { %246 = vsyncadd [#allocation4], 4294967040 }
  0x42   :  { %151 = vsyncpa [#allocation3], 1 }
  0x43   :  { %152 = vsyncpa [#allocation6], 1 }
  0x44   :  { %153 = vsyncpa [#allocation4], 1 }

</bundles_post_ra>
